<compile_context>
chip_gen: v7x
topology: tpu7x:2x2x1
jax: 0.10.0
libtpu: 0.0.40
codegen_flags: <defaults>
</compile_context>

<pallas_src>
import jax
import jax.numpy as jnp
from jax.experimental import pallas as pl
from jax.experimental.pallas import tpu as pltpu


def _align_up(n, m):
    return ((n + m - 1) // m) * m


def _matrix_embedding_kernel(x_ref, w_ref, o_ref):
    # x_ref: (TB, L*F)  lags flattened onto the lane axis (lane-aligned F-wide slices)
    # w_ref: (1, L*F)   flattened lag_factor (tiny, same block every grid step)
    # o_ref: (TB, F)    output block
    F = o_ref.shape[-1]
    LF = x_ref.shape[-1]
    L = LF // F
    # One broadcast of the (1, L*F) weights over the block, one full-block VPU
    # multiply, then L-1 adds on lane-aligned F-wide slices.  f32 accumulation.
    prod = x_ref[...].astype(jnp.float32) * w_ref[...].astype(jnp.float32)
    acc = prod[:, 0:F]
    for l in range(1, L):                       # static unroll (L is small)
        acc = acc + prod[:, l * F:(l + 1) * F]
    o_ref[...] = acc.astype(o_ref.dtype)


def _device_vmem_capacity_bytes():
    """Physical VMEM of the attached TPU; conservative fallback if unavailable."""
    try:
        info = pltpu.get_tpu_info()
        cap = getattr(info, "vmem_capacity_bytes", None)
        if cap:
            return int(cap)
    except Exception:
        pass
    return 64 * 1024 * 1024   # v7x physical VMEM (smallest across generations)


def _pick_batch_tile(B, L, F, itemsize, align):
    """Device-aware batch tile:
       - budget derived from physical VMEM (not a one-size-fits-all constant),
       - per-row bytes include double-buffered in/out blocks AND f32 temporaries,
       - tiles up to 4096 rows to amortize the ~0.35 us per-grid-step overhead,
       - but capped so large batches produce >=2 (>=4) grid steps for megacore."""
    capacity = _device_vmem_capacity_bytes()
    budget = min(capacity // 2, 32 * 1024 * 1024)
    per_row = 2 * (L * F + F) * itemsize + (L * F + F) * 4   # dbl-buffered blocks + f32 temps
    max_rows = max(align, budget // per_row)
    tile = min(4096, max_rows)
    # Keep multiple grid steps for megacore sharding / pipelining on bigger batches.
    if B >= 4096:
        tile = min(tile, _align_up(pl.cdiv(B, 4), align))
    elif B >= 1024:
        tile = min(tile, _align_up(pl.cdiv(B, 2), align))
    tile = max(align, (tile // align) * align)
    if tile >= B:
        # Small batch: single (or near-single) block, minimally rounded up.
        tile = _align_up(B, align)
    return tile


def matrix_embedding_forward(lags_vectors, lag_factor, *, batch_tile=None,
                             vmem_limit_bytes=None):
    """lags_vectors: (B, L, F), lag_factor: (L, F) -> (B, F)."""
    B, L, F = lags_vectors.shape
    assert lag_factor.shape == (L, F)
    out_dtype = jnp.result_type(lags_vectors.dtype, lag_factor.dtype)
    itemsize = lags_vectors.dtype.itemsize

    # dtype-aware sublane alignment: 8 rows (f32), 16 (bf16), 32 (int8/fp8).
    align = max(8, 32 // max(1, itemsize))

    # Guard for unusual configs: keep output stores lane-dense by padding F (not B).
    # Not triggered for F % 128 == 0 (the normal case), so no extra HBM pass here.
    x = lags_vectors
    w = lag_factor
    F_k = F
    if F % 128 != 0:
        F_k = _align_up(F, 128)
        x = jnp.pad(x, ((0, 0), (0, 0), (0, F_k - F)))
        w = jnp.pad(w, ((0, 0), (0, F_k - F)))

    # Free, metadata-only reshapes of contiguous arrays: lags live on the lane axis.
    x2d = x.reshape(B, L * F_k)
    w2d = w.reshape(1, L * F_k)

    if batch_tile is None:
        batch_tile = _pick_batch_tile(B, L, F_k, itemsize, align)
    batch_tile = max(align, _align_up(batch_tile, align))

    # No whole-array padding: Pallas masks the partial tail block's output rows.
    grid_b = pl.cdiv(B, batch_tile)

    if vmem_limit_bytes is None:
        needed = batch_tile * (2 * (L * F_k + F_k) * itemsize + (L * F_k + F_k) * 4)
        needed += 4 * L * F_k * lag_factor.dtype.itemsize + (2 << 20)
        capacity = _device_vmem_capacity_bytes()
        vmem_limit_bytes = int(min(capacity * 3 // 4, needed + (16 << 20)))

    cost = pl.CostEstimate(
        flops=2 * B * L * F,
        transcendentals=0,
        bytes_accessed=(B * L * F + B * F) * itemsize + L * F * lag_factor.dtype.itemsize,
    )

    out = pl.pallas_call(
        _matrix_embedding_kernel,
        out_shape=jax.ShapeDtypeStruct((B, F_k), out_dtype),
        grid_spec=pltpu.PrefetchScalarGridSpec(
            num_scalar_prefetch=0,
            grid=(grid_b,),
            in_specs=[
                # Batch-tiled activations; lags flattened into the lane axis.
                pl.BlockSpec((batch_tile, L * F_k), lambda i: (i, 0)),
                # Tiny shared weights; same block every step => no per-step re-DMA.
                pl.BlockSpec((1, L * F_k), lambda i: (0, 0)),
            ],
            out_specs=pl.BlockSpec((batch_tile, F_k), lambda i: (i, 0)),
        ),
        compiler_params=pltpu.CompilerParams(
            dimension_semantics=("parallel",),
            vmem_limit_bytes=vmem_limit_bytes,
        ),
        cost_estimate=cost,
    )(x2d, w2d)

    return out[:, :F] if F_k != F else out


def matrix_embedding_ref(lags_vectors, lag_factor):
    return jnp.sum(lags_vectors * lag_factor[None, :, :], axis=1)


if __name__ == "__main__":
    # Module config: lag_set of 4 lags, factors=128 (lane-dense last dim).
    lag_set = [1, 2, 4, 8]
    lags = len(lag_set)
    factors = 128
    batch = 8

    key = jax.random.PRNGKey(0)
    k_w, k_x = jax.random.split(key)

    # torch.rand -> uniform [0, 1)
    lag_factor = jax.random.uniform(k_w, (lags, factors), dtype=jnp.float32)
    lags_vectors = jax.random.normal(k_x, (batch, lags, factors), dtype=jnp.float32)

    out = jax.block_until_ready(matrix_embedding_forward(lags_vectors, lag_factor))
    ref = matrix_embedding_ref(lags_vectors, lag_factor)
    assert out.shape == (batch, factors)
    assert jnp.allclose(out, ref, atol=1e-5, rtol=1e-5), "mismatch vs reference"

    # Exercise the multi-step grid and the ragged-batch (partial tail block, no pad) path.
    x2 = jax.random.normal(jax.random.PRNGKey(1), (10, lags, factors), dtype=jnp.float32)
    out2 = jax.block_until_ready(matrix_embedding_forward(x2, lag_factor, batch_tile=8))
    ref2 = matrix_embedding_ref(x2, lag_factor)
    assert out2.shape == (10, factors)
    assert jnp.allclose(out2, ref2, atol=1e-5, rtol=1e-5), "mismatch vs reference (tiled)"

    print("KERNEL_OK")
</pallas_src>

<mosaic_0001>
module attributes {stable_mosaic.version = 11 : i64} {
  func.func @_matrix_embedding_kernel(%arg0: i32, %arg1: memref<8x512xf32, #tpu.memory_space<vmem>>, %arg2: memref<1x512xf32, #tpu.memory_space<vmem>>, %arg3: memref<8x128xf32, #tpu.memory_space<vmem>>) attributes {dimension_semantics = [#tpu.dimension_semantics<parallel>], iteration_bounds = array<i64: 1>, scalar_prefetch = 0 : i64, scratch_operands = 0 : i64, tpu.core_type = #tpu.core_type<tc>, window_params = [{transform_indices = @transform_0, window_bounds = array<i64: 8, 512>}, {pipeline_mode = #tpu.pipeline_mode<synchronous>, transform_indices = @transform_1, window_bounds = array<i64: 1, 512>}, {transform_indices = @transform_2, window_bounds = array<i64: 8, 128>}]} {
    %c0 = arith.constant 0 : index
    %c0_0 = arith.constant 0 : index
    %0 = vector.load %arg1[%c0, %c0_0] : memref<8x512xf32, #tpu.memory_space<vmem>>, vector<8x512xf32>
    %c0_1 = arith.constant 0 : index
    %c0_2 = arith.constant 0 : index
    %1 = vector.load %arg2[%c0_1, %c0_2] : memref<1x512xf32, #tpu.memory_space<vmem>>, vector<1x512xf32>
    %2 = vector.broadcast %1 : vector<1x512xf32> to vector<8x512xf32>
    %3 = arith.mulf %0, %2 : vector<8x512xf32>
    %4 = vector.extract_strided_slice %3 {offsets = [0, 0], sizes = [8, 128], strides = [1, 1]} : vector<8x512xf32> to vector<8x128xf32>
    %5 = vector.extract_strided_slice %3 {offsets = [0, 128], sizes = [8, 128], strides = [1, 1]} : vector<8x512xf32> to vector<8x128xf32>
    %6 = arith.addf %4, %5 : vector<8x128xf32>
    %7 = vector.extract_strided_slice %3 {offsets = [0, 256], sizes = [8, 128], strides = [1, 1]} : vector<8x512xf32> to vector<8x128xf32>
    %8 = arith.addf %6, %7 : vector<8x128xf32>
    %9 = vector.extract_strided_slice %3 {offsets = [0, 384], sizes = [8, 128], strides = [1, 1]} : vector<8x512xf32> to vector<8x128xf32>
    %10 = arith.addf %8, %9 : vector<8x128xf32>
    %c0_3 = arith.constant 0 : index
    %c0_4 = arith.constant 0 : index
    %11 = vector.load %arg3[%c0_3, %c0_4] : memref<8x128xf32, #tpu.memory_space<vmem>>, vector<8x128xf32>
    tpu.vector_store %arg3[%c0_3, %c0_4], %10 {strides = array<i32>} : memref<8x128xf32, #tpu.memory_space<vmem>>, vector<8x128xf32>,
    return
  }
  func.func @transform_0(%arg0: i32) -> (i32, i32) {
    %c0_i32 = arith.constant 0 : i32
    %c0_i32_0 = arith.constant 0 : i32
    return %arg0, %c0_i32 : i32, i32
  }
  func.func @transform_1(%arg0: i32) -> (i32, i32) {
    %c0_i32 = arith.constant 0 : i32
    %c0_i32_0 = arith.constant 0 : i32
    %c0_i32_1 = arith.constant 0 : i32
    return %c0_i32, %c0_i32_0 : i32, i32
  }
  func.func @transform_2(%arg0: i32) -> (i32, i32) {
    %c0_i32 = arith.constant 0 : i32
    %c0_i32_0 = arith.constant 0 : i32
    return %arg0, %c0_i32 : i32, i32
  }
}

</mosaic_0001>

<bundles_post_ra>
// kernel: tpu_custom_call.1
= control target key start
LH: loop header
LB: loop body
LE: loop exit
PB: predicated region body
PF: predicated region fallthrough
CT: control target
= control target key end

     0   :  { %7 = vsyncpa [#allocation3], 0  ;;  %s215_s0 = inlined_call_operand.hbm [shape: f32[8,512], index: 0, kind: input, shape index: {}]   ;;  %s216_s1 = inlined_call_operand.hbm [shape: f32[1,512], index: 1, kind: input, shape index: {}]   ;;  %s217_s2 = inlined_call_operand.hbm [shape: f32[8,128], index: 2, kind: output, shape index: {}]  }
   0x1   :  { %8 = vsyncpa [#allocation6], 0 }
   0x2   :  { %9 = vsyncpa [#allocation4], 0  ;;  %s161_s9 = smov [#allocation2]   ;;  %s162_s11 = smov [#allocation5]  }
   0x3   :  { %s16_s10 = sshll.u32 %s161_s9, 4  ;;  %s26_s12 = sshll.u32 %s162_s11, 4  ;;  %s17_s10 = int_to_ptr.vmem [resolvable:$true] %s16_s10  ;;  %s27_s12 = int_to_ptr.vmem [resolvable:$true] %s26_s12 }
   0x4   :  { %s89_s15 = scalar_lea.hbm %s215_s0, 512 }
   0x5   :  { %p90_p0 = scmp.ne.s32.totalorder %s215_s0, %s89_s15  ;;  %p93_p1 = scmp.lt.u32.totalorder %s89_s15, %s215_s0 }
   0x7   :  { %p95_p2 = pnand %p93_p1, %p90_p0 }
   0x9   :  { %98 = shalt.err (!%p95_p2)
}
   0xa   :  { %s99_s20 = scalar_lea.vmem %s17_s10, 512  ;;  %p104_p4 = scmp.lt.s32.totalorder %s17_s10, %s17_s10 }
   0xb   :  { %p100_p3 = scmp.ne.s32.totalorder %s17_s10, %s99_s20  ;;  %p105_p5 = scmp.lt.s32.totalorder %s99_s20, %s99_s20 }
   0xd   :  { %p106_p6 = por %p105_p5, %p104_p4 }
   0xf   :  { %p107_p7 = pnand %p106_p6, %p100_p3 }
  0x11   :  { %110 = shalt.err (!%p107_p7)
}
  0x12   :  { %19 = dma.hbm_to_vmem [thread:$0]  %s215_s0, 512, %s17_s10, [#allocation3]  }
  0x13   :  { %s111_s25 = scalar_lea.hbm %s216_s1, 64 }
  0x14   :  { %p112_p8 = scmp.ne.s32.totalorder %s216_s1, %s111_s25  ;;  %p115_p9 = scmp.lt.u32.totalorder %s111_s25, %s216_s1 }
  0x16   :  { %p117_p10 = pnand %p115_p9, %p112_p8 }
  0x18   :  { %120 = shalt.err (!%p117_p10)
}
  0x19   :  { %s121_s30 = scalar_lea.vmem %s27_s12, 64  ;;  %p126_p12 = scmp.lt.s32.totalorder %s27_s12, %s27_s12 }
  0x1a   :  { %p122_p11 = scmp.ne.s32.totalorder %s27_s12, %s121_s30  ;;  %p127_p13 = scmp.lt.s32.totalorder %s121_s30, %s121_s30 }
  0x1c   :  { %p128_p0 = por %p127_p13, %p126_p12 }
  0x1e   :  { %p129_p1 = pnand %p128_p0, %p122_p11 }
  0x20   :  { %132 = shalt.err (!%p129_p1)
}
  0x21   :  { %29 = dma.hbm_to_vmem [thread:$0]  %s216_s1, 64, %s27_s12, [#allocation6]  }
  0x22   :  { %155 = dma.done.wait [#allocation3], 512  }
  0x23   :  { %156 = vsyncadd [#allocation3], 4294966784 }
  0x24   :  { %157 = dma.done.wait [#allocation6], 64  }
  0x25   :  { %158 = vsyncadd [#allocation6], 4294967232  ;;  %v42_v0 = vlaneseq  ;;  %v36_v6 = vld [vmem:[#allocation2] sm:$0xff]  ;;  %v37_v7 = vld [vmem:[#allocation2 + $0x8] sm:$0xff]  ;;  %s163_s1 = smov [#allocation7]  }
  0x26   :  { %v38_v8 = vld [vmem:[#allocation2 + $0x10] sm:$0xff]  ;;  %v40_v9 = vld [vmem:[#allocation5] sm:$0xf]  ;;  %v39_v14 = vld [vmem:[#allocation2 + $0x18] sm:$0xff]  ;;  %s76_s4 = sshll.u32 %s163_s1, 4  ;;  %s77_s4 = int_to_ptr.vmem [resolvable:$true] %s76_s4 }
  0x27   :  { %v43_v1 = vshrl.u32 %v42_v0, 7  ;;  %s133_s5 = scalar_lea.vmem %s77_s4, 128  ;;  %p138_p3 = scmp.lt.s32.totalorder %s77_s4, %s77_s4 }
  0x28   :  { %p134_p2 = scmp.ne.s32.totalorder %s77_s4, %s133_s5  ;;  %p139_p4 = scmp.lt.s32.totalorder %s133_s5, %s133_s5 }
  0x29   :  { %v44_v2 = vsub.s32 0, %v43_v1  ;;  %v48_v3 = vsub.s32 1, %v43_v1  ;;  %v52_v4 = vsub.s32 2, %v43_v1  ;;  %v56_v5 = vsub.s32 3, %v43_v1 }
  0x2a   :  { %p140_p5 = por %p139_p4, %p138_p3 }
  0x2b   :  { %v45_v10 = vrot.slane %v40_v9, %v44_v2  ;;  %v49_v11 = vrot.slane %v40_v9, %v48_v3  ;;  %v53_v12 = vrot.slane %v40_v9, %v52_v4  ;;  %v57_v13 = vrot.slane %v40_v9, %v56_v5 }
  0x2c   :  { %p141_p6 = pnand %p140_p5, %p134_p2 }
  0x2d   :  { %v62_v15 = vmul.f32 %v45_v10, %v36_v6  ;;  %v63_v16 = vmul.f32 %v49_v11, %v37_v7  ;;  %v64_v17 = vmul.f32 %v53_v12, %v38_v8  ;;  %v65_v18 = vmul.f32 %v57_v13, %v39_v14 }
  0x2f   :  { %v66_v19 = vadd.f32 %v63_v16, %v62_v15 }
  0x31   :  { %v67_v20 = vadd.f32 %v66_v19, %v64_v17 }
  0x33   :  { %v68_v21 = vadd.f32 %v67_v20, %v65_v18 }
  0x35   :  { %69 = vst [vmem:[#allocation7] sm:$0xff] %v68_v21 }
  0x36   :  { %144 = shalt.err (!%p141_p6)
}
  0x37   :  { %s145_s8 = scalar_lea.hbm %s217_s2, 128 }
  0x38   :  { %p146_p7 = scmp.ne.s32.totalorder %s217_s2, %s145_s8  ;;  %p149_p8 = scmp.lt.u32.totalorder %s145_s8, %s217_s2 }
  0x3a   :  { %p151_p9 = pnand %p149_p8, %p146_p7 }
  0x3c   :  { %154 = shalt.err (!%p151_p9)
}
  0x3d   :  { %79 = dma.vmem_to_hbm [thread:$0]  %s77_s4, 128, %s217_s2, [#allocation4]  }
  0x3e   :  { %159 = dma.done.wait [#allocation4], 128  }
  0x3f   :  { %160 = vsyncadd [#allocation4], 4294967168 }
  0x40   :  { %83 = vsyncpa [#allocation3], 1 }
  0x41   :  { %84 = vsyncpa [#allocation6], 1 }
  0x42   :  { %85 = vsyncpa [#allocation4], 1 }

</bundles_post_ra>
